<compile_context>
chip_gen: v7x
topology: tpu7x:2x2x1
jax: 0.10.0
libtpu: 0.0.40
codegen_flags: <defaults>
</compile_context>

<pallas_src>
import jax
import jax.numpy as jnp
from jax.experimental import pallas as pl
from jax.experimental.pallas import tpu as pltpu


# ----------------------------- helpers -------------------------------------- #

def _round_up(x, m):
    return (x + m - 1) // m * m


# ----------------------------- Pallas kernels ------------------------------- #

def _cs_shared_kernel(x_ref, wnet_ref, a_ref, b_ref, o_ref):
    """n_batch == 1: a/b were computed once in the wrapper and are resident rows."""
    y = jnp.dot(x_ref[...].astype(wnet_ref.dtype), wnet_ref[...],
                preferred_element_type=jnp.float32)
    o_ref[...] = (a_ref[...].astype(jnp.float32) * y
                  + b_ref[...].astype(jnp.float32)).astype(o_ref.dtype)


def _cs_perpoint_kernel(x_ref, wnet_ref, t_ref,
                        w1_ref, b1_ref, w2_ref, b2_ref, w3_ref, b3_ref,
                        o_ref):
    """n_batch == N: per-point hyper-MLPs fused in-kernel so a/b never touch HBM.

    Stacked weights: index 0 = gate MLP, index 1 = bias MLP.  All dots accumulate
    in f32; SiLU and the final a*y+b run in f32 (safe on v5e's f32-only VPU/EUP).
    """
    t = t_ref[...]

    def mlp(k):
        h = jnp.dot(t.astype(w1_ref.dtype), w1_ref[k],
                    preferred_element_type=jnp.float32) + b1_ref[k].astype(jnp.float32)
        h = h * jax.nn.sigmoid(h)                                   # SiLU
        h = jnp.dot(h.astype(w2_ref.dtype), w2_ref[k],
                    preferred_element_type=jnp.float32) + b2_ref[k].astype(jnp.float32)
        h = h * jax.nn.sigmoid(h)                                   # SiLU
        return jnp.dot(h.astype(w3_ref.dtype), w3_ref[k],
                       preferred_element_type=jnp.float32) + b3_ref[k].astype(jnp.float32)

    a = mlp(0)
    b = mlp(1)
    y = jnp.dot(x_ref[...].astype(wnet_ref.dtype), wnet_ref[...],
                preferred_element_type=jnp.float32)
    o_ref[...] = (a * y + b).astype(o_ref.dtype)


# ------------------------------- Wrapper ------------------------------------ #

def _hyper_mlp(params6, t2):
    """Tiny hyper-MLP evaluated with plain JAX (used only for the n_batch==1 hoist)."""
    w1, b1, w2, b2, w3, b3 = params6
    h = jax.nn.silu(t2 @ w1 + b1)
    h = jax.nn.silu(h @ w2 + b2)
    return h @ w3 + b3


def concat_squash_main(x, w_net_t, t2, gate, bias, *,
                       tile_n=8192, stream_dtype=None, return_padded=False):
    """Single fused launch.

    x:        (N, in_dim) points
    w_net_t:  (in_dim, out_dim) net weight, pre-transposed
    t2:       (n_batch, t_dim) with n_batch in {1, N}
    gate/bias: 6-tuples (w1t, b1, w2t, b2, w3t, b3), weights pre-transposed
    stream_dtype: None (keep f32) or jnp.bfloat16 to halve streamed HBM bytes
    return_padded: skip the post-kernel slice and hand back the (n_pad, out_pad)
                   slab (padded rows/cols are exact-zero x @ W contributions).
    """
    N, in_dim = x.shape
    out_dim = w_net_t.shape[1]
    n_batch, t_dim = t2.shape
    hidden = gate[0].shape[1]
    out_dtype = x.dtype

    if n_batch not in (1, N):
        # Same constraint PyTorch broadcasting imposes on `a * self.net(x)`.
        raise ValueError("t rows (n_batch) must broadcast against x rows (1 or N)")

    # --- lane-dense output: pad out_dim up to a multiple of 128 (unmasked vst) -- #
    out_pad = _round_up(out_dim, 128)
    pad_c = out_pad - out_dim

    def pad_cols(m):
        return jnp.pad(m, ((0, 0), (0, pad_c))) if pad_c else m

    # --- row tiling: big tiles amortize per-step overhead; keep >= 2 grid steps
    #     so the 'parallel' axis can be sharded across v7x's 2 TensorCores.
    cap = _round_up(max(int(pl.cdiv(N, 2)), 8), 8)
    tile_n = max(8, (min(int(tile_n), cap) // 8) * 8)
    num_tiles = int(pl.cdiv(N, tile_n))
    n_pad = num_tiles * tile_n

    x_p = x if n_pad == N else jnp.pad(x, ((0, n_pad - N), (0, 0)))
    w_net_p = pad_cols(w_net_t)
    if stream_dtype is not None:
        x_p = x_p.astype(stream_dtype)
        w_net_p = w_net_p.astype(stream_dtype)

    resident2 = lambda shape: pl.BlockSpec(shape, lambda i: (0, 0))
    resident3 = lambda shape: pl.BlockSpec(shape, lambda i: (0, 0, 0))

    compiler_params = pltpu.CompilerParams(
        dimension_semantics=("parallel",),          # N-tiles are independent
        vmem_limit_bytes=32 * 1024 * 1024,          # v7x scoped default; usage ~10 MiB
    )
    out_shape = jax.ShapeDtypeStruct((n_pad, out_pad), out_dtype)
    out_spec = pl.BlockSpec((tile_n, out_pad), lambda i: (i, 0))
    x_spec = pl.BlockSpec((tile_n, in_dim), lambda i: (i, 0))

    if n_batch == 1:
        # Hoist the two tiny hyper-MLPs out of the kernel: 6 serially-dependent tiny
        # MXU dots + 4 sigmoid chains per grid step were pure latency.  a/b become
        # two resident (1, out_pad) rows; the kernel takes 4 operands.
        a = pad_cols(_hyper_mlp(gate, t2)).astype(jnp.float32)
        b = pad_cols(_hyper_mlp(bias, t2)).astype(jnp.float32)
        out_padded = pl.pallas_call(
            _cs_shared_kernel,
            out_shape=out_shape,
            grid_spec=pltpu.PrefetchScalarGridSpec(
                num_scalar_prefetch=0,
                grid=(num_tiles,),
                in_specs=[x_spec,                               # x tile (streamed)
                          resident2((in_dim, out_pad)),         # W.T (invariant)
                          resident2((1, out_pad)),              # a row
                          resident2((1, out_pad))],             # b row
                out_specs=out_spec),
            compiler_params=compiler_params,
        )(x_p, w_net_p, a, b)
    else:
        # Per-point conditioning: fuse the hyper-MLPs so a/b never round-trip HBM.
        # Gate/bias weights are stacked per layer -> 9 kernel refs instead of 15.
        t_p = t2 if n_pad == N else jnp.pad(t2, ((0, n_pad - N), (0, 0)))
        gw1, gb1, gw2, gb2, gw3, gb3 = gate
        bw1, bb1, bw2, bb2, bw3, bb3 = bias
        w1s = jnp.stack([gw1, bw1]); b1s = jnp.stack([gb1, bb1])
        w2s = jnp.stack([gw2, bw2]); b2s = jnp.stack([gb2, bb2])
        w3s = jnp.stack([pad_cols(gw3), pad_cols(bw3)])   # padded cols are exact zeros
        b3s = jnp.stack([pad_cols(gb3), pad_cols(bb3)])
        if stream_dtype is not None:
            t_p = t_p.astype(stream_dtype)
            w1s = w1s.astype(stream_dtype)
            w2s = w2s.astype(stream_dtype)
            w3s = w3s.astype(stream_dtype)
            # biases stay f32: added to the f32 dot accumulators.
        out_padded = pl.pallas_call(
            _cs_perpoint_kernel,
            out_shape=out_shape,
            grid_spec=pltpu.PrefetchScalarGridSpec(
                num_scalar_prefetch=0,
                grid=(num_tiles,),
                in_specs=[x_spec,                                          # x tile
                          resident2((in_dim, out_pad)),                    # W.T
                          pl.BlockSpec((tile_n, t_dim), lambda i: (i, 0)), # t tile
                          resident3((2, t_dim, hidden)),                   # layer-1 W
                          resident3((2, 1, hidden)),                       # layer-1 b
                          resident3((2, hidden, hidden)),                  # layer-2 W
                          resident3((2, 1, hidden)),                       # layer-2 b
                          resident3((2, hidden, out_pad)),                 # layer-3 W
                          resident3((2, 1, out_pad))],                     # layer-3 b
                out_specs=out_spec),
            compiler_params=compiler_params,
        )(x_p, w_net_p, t_p, w1s, b1s, w2s, b2s, w3s, b3s)

    if return_padded or (n_pad == N and pad_c == 0):
        return out_padded
    # One slice to restore the exact PyTorch shape; pass return_padded=True to let a
    # downstream consumer take the zero-padded slab and skip this extra HBM pass.
    return out_padded[:N, :out_dim]


# --------------------------- Parameter construction ------------------------- #

def init_linear(key, fan_in, fan_out):
    """torch.nn.Linear default init: U(-1/sqrt(fan_in), 1/sqrt(fan_in))."""
    kw, kb = jax.random.split(key)
    bound = 1.0 / (fan_in ** 0.5)
    w_t = jax.random.uniform(kw, (fan_in, fan_out), jnp.float32, -bound, bound)
    b = jax.random.uniform(kb, (1, fan_out), jnp.float32, -bound, bound)
    return w_t, b


def init_hyper_mlp(key, t_dim, hidden_dim, out_dim):
    k1, k2, k3 = jax.random.split(key, 3)
    w1t, b1 = init_linear(k1, t_dim, hidden_dim)
    w2t, b2 = init_linear(k2, hidden_dim, hidden_dim)
    w3t, b3 = init_linear(k3, hidden_dim, out_dim)
    return (w1t, b1, w2t, b2, w3t, b3)


def init_concat_squash(key, in_dim, out_dim, t_dim, hidden_dim):
    kg, kb, kn = jax.random.split(key, 3)
    bound = 1.0 / (in_dim ** 0.5)
    net_w_t = jax.random.uniform(kn, (in_dim, out_dim), jnp.float32, -bound, bound)
    return {
        "gate": init_hyper_mlp(kg, t_dim, hidden_dim, out_dim),
        "bias": init_hyper_mlp(kb, t_dim, hidden_dim, out_dim),
        "net_w_t": net_w_t,   # nn.Linear(in_dim, out_dim, bias=False), pre-transposed
    }


# ------------------------------- Forward pass ------------------------------- #

def concat_squash_forward(params, x, t, batch=None, *, tile_n=8192, stream_dtype=None):
    """Jittable forward.  `batch` is accepted for API parity with the PyTorch module
    but not read: torch's t.view(n_batch, t_dim) already forces n_batch equal to
    t.numel() // t_dim, which is static here (no device->host sync)."""
    del batch
    t_dim = params["gate"][0].shape[0]
    n_batch = t.size // t_dim
    t2 = t.reshape(n_batch, t_dim)
    return concat_squash_main(x, params["net_w_t"], t2, params["gate"], params["bias"],
                              tile_n=tile_n, stream_dtype=stream_dtype)


def concat_squash_reference(params, x, t, batch=None):
    """Pure-JAX reference mirroring the PyTorch forward."""
    t_dim = params["gate"][0].shape[0]
    n_batch = t.size // t_dim
    t2 = t.reshape(n_batch, t_dim)
    a = _hyper_mlp(params["gate"], t2)
    b = _hyper_mlp(params["bias"], t2)
    return a * (x @ params["net_w_t"]) + b


# ----------------------------------- Main ------------------------------------ #

if __name__ == "__main__":
    in_dim, out_dim, t_dim, hidden_dim = 8, 16, 4, 32

    key = jax.random.PRNGKey(0)
    kp, kx1, kt1, kx2, kt2 = jax.random.split(key, 5)
    params = init_concat_squash(kp, in_dim, out_dim, t_dim, hidden_dim)

    fwd = jax.jit(concat_squash_forward, static_argnames=("tile_n", "stream_dtype"))

    # Case 1: single graph (n_batch = 1); hoisted hyper-MLP path, big tiles (>=2 steps).
    N1 = 2048
    x1 = jax.random.normal(kx1, (N1, in_dim), jnp.float32)
    t1 = jax.random.normal(kt1, (t_dim,), jnp.float32)       # .view -> (1, t_dim)
    batch1 = jnp.zeros((N1,), jnp.int32)
    out1 = jax.block_until_ready(fwd(params, x1, t1, batch1))
    ref1 = concat_squash_reference(params, x1, t1, batch1)
    assert out1.shape == (N1, out_dim)
    assert jnp.allclose(out1, ref1, atol=1e-5, rtol=1e-5), "mismatch (n_batch=1)"

    # Case 2: per-point conditioning (n_batch = N), ragged N w.r.t. the tile.
    N2 = 1000
    x2 = jax.random.normal(kx2, (N2, in_dim), jnp.float32)
    t2 = jax.random.normal(kt2, (N2, t_dim), jnp.float32)
    batch2 = jnp.arange(N2, dtype=jnp.int32)
    out2 = jax.block_until_ready(fwd(params, x2, t2, batch2, tile_n=256))
    ref2 = concat_squash_reference(params, x2, t2, batch2)
    assert out2.shape == (N2, out_dim)
    assert jnp.allclose(out2, ref2, atol=1e-5, rtol=1e-5), "mismatch (n_batch=N)"

    # Case 3: bf16 streaming (halved HBM bytes); dots still accumulate in f32, so
    # only the input-quantization error shows up -> looser tolerance.
    out3 = jax.block_until_ready(
        fwd(params, x2, t2, batch2, tile_n=256, stream_dtype=jnp.bfloat16))
    assert out3.shape == (N2, out_dim)
    assert jnp.allclose(out3, ref2, atol=5e-2, rtol=5e-2), "mismatch (bf16 streaming)"

    print("KERNEL_OK")
</pallas_src>

<mosaic_0001>
module attributes {stable_mosaic.version = 11 : i64} {
  func.func @_cs_shared_kernel(%arg0: i32, %arg1: memref<1024x8xf32, #tpu.memory_space<vmem>>, %arg2: memref<8x128xf32, #tpu.memory_space<vmem>>, %arg3: memref<1x128xf32, #tpu.memory_space<vmem>>, %arg4: memref<1x128xf32, #tpu.memory_space<vmem>>, %arg5: memref<1024x128xf32, #tpu.memory_space<vmem>>) attributes {dimension_semantics = [#tpu.dimension_semantics<parallel>], iteration_bounds = array<i64: 2>, scalar_prefetch = 0 : i64, scratch_operands = 0 : i64, tpu.core_type = #tpu.core_type<tc>, window_params = [{transform_indices = @transform_0, window_bounds = array<i64: 1024, 8>}, {pipeline_mode = #tpu.pipeline_mode<synchronous>, transform_indices = @transform_1, window_bounds = array<i64: 8, 128>}, {pipeline_mode = #tpu.pipeline_mode<synchronous>, transform_indices = @transform_2, window_bounds = array<i64: 1, 128>}, {pipeline_mode = #tpu.pipeline_mode<synchronous>, transform_indices = @transform_3, window_bounds = array<i64: 1, 128>}, {transform_indices = @transform_4, window_bounds = array<i64: 1024, 128>}]} {
    %c0 = arith.constant 0 : index
    %c0_0 = arith.constant 0 : index
    %0 = vector.load %arg1[%c0, %c0_0] : memref<1024x8xf32, #tpu.memory_space<vmem>>, vector<1024x8xf32>
    %c0_1 = arith.constant 0 : index
    %c0_2 = arith.constant 0 : index
    %1 = vector.load %arg2[%c0_1, %c0_2] : memref<8x128xf32, #tpu.memory_space<vmem>>, vector<8x128xf32>
    %cst = arith.constant dense<0.000000e+00> : vector<1024x128xf32>
    %2 = tpu.matmul %0, %1, %cst {dimension_numbers = #tpu.dot_dimension_numbers<[1], [0], [0], [1], [0, 0, 1, 1], [], []>} : vector<1024x8xf32>, vector<8x128xf32>, vector<1024x128xf32> -> vector<1024x128xf32>
    %c0_3 = arith.constant 0 : index
    %c0_4 = arith.constant 0 : index
    %3 = vector.load %arg3[%c0_3, %c0_4] : memref<1x128xf32, #tpu.memory_space<vmem>>, vector<1x128xf32>
    %4 = vector.broadcast %3 : vector<1x128xf32> to vector<1024x128xf32>
    %5 = arith.mulf %4, %2 : vector<1024x128xf32>
    %c0_5 = arith.constant 0 : index
    %c0_6 = arith.constant 0 : index
    %6 = vector.load %arg4[%c0_5, %c0_6] : memref<1x128xf32, #tpu.memory_space<vmem>>, vector<1x128xf32>
    %7 = vector.broadcast %6 : vector<1x128xf32> to vector<1024x128xf32>
    %8 = arith.addf %5, %7 : vector<1024x128xf32>
    %c0_7 = arith.constant 0 : index
    %c0_8 = arith.constant 0 : index
    %9 = vector.load %arg5[%c0_7, %c0_8] : memref<1024x128xf32, #tpu.memory_space<vmem>>, vector<1024x128xf32>
    tpu.vector_store %arg5[%c0_7, %c0_8], %8 {strides = array<i32>} : memref<1024x128xf32, #tpu.memory_space<vmem>>, vector<1024x128xf32>,
    return
  }
  func.func @transform_0(%arg0: i32) -> (i32, i32) {
    %c0_i32 = arith.constant 0 : i32
    %c0_i32_0 = arith.constant 0 : i32
    return %arg0, %c0_i32 : i32, i32
  }
  func.func @transform_1(%arg0: i32) -> (i32, i32) {
    %c0_i32 = arith.constant 0 : i32
    %c0_i32_0 = arith.constant 0 : i32
    %c0_i32_1 = arith.constant 0 : i32
    return %c0_i32, %c0_i32_0 : i32, i32
  }
  func.func @transform_2(%arg0: i32) -> (i32, i32) {
    %c0_i32 = arith.constant 0 : i32
    %c0_i32_0 = arith.constant 0 : i32
    %c0_i32_1 = arith.constant 0 : i32
    return %c0_i32, %c0_i32_0 : i32, i32
  }
  func.func @transform_3(%arg0: i32) -> (i32, i32) {
    %c0_i32 = arith.constant 0 : i32
    %c0_i32_0 = arith.constant 0 : i32
    %c0_i32_1 = arith.constant 0 : i32
    return %c0_i32, %c0_i32_0 : i32, i32
  }
  func.func @transform_4(%arg0: i32) -> (i32, i32) {
    %c0_i32 = arith.constant 0 : i32
    %c0_i32_0 = arith.constant 0 : i32
    return %arg0, %c0_i32 : i32, i32
  }
}

</mosaic_0001>

<bundles_post_ra>
// kernel: concat_squash_forward.1
= control target key start
LH: loop header
LB: loop body
LE: loop exit
PB: predicated region body
PF: predicated region fallthrough
CT: control target
= control target key end

     0   :  { %s2381_s15 = smov 0   ;;  %s3062_s0 = inlined_call_operand.vmem [shape: f32[2048,8], index: 0, kind: input, shape index: {}]   ;;  %s3063_s1 = inlined_call_operand.vmem [shape: f32[8,128], index: 1, kind: input, shape index: {}]   ;;  %s3064_s2 = inlined_call_operand.vmem [shape: f32[1,128], index: 2, kind: input, shape index: {}]   ;;  %s3065_s3 = inlined_call_operand.vmem [shape: f32[1,128], index: 3, kind: input, shape index: {}]   ;;  %s3066_s4 = inlined_call_operand.vmem [shape: f32[2048,128], index: 4, kind: output, shape index: {}]  }
   0x1 LB: > { %s1874_s16 = sadd.s32 4294967295, %s2354_s15   ;;  %p1878_p0 = scmp.ge.s32.totalorder %s2354_s15, 1  ;;  %s2354_s15 = sphi %s2381_s15, %s14_s15  }
   0x2   : > { %p163_p1 = scmp.lt.s32.totalorder %s2354_s15, 3 }
   0x4   : > { %p164_p2 = pnand %p1878_p0, %p163_p1 }
   0x5   : > { %v329_v0 = vld [vmem:[%s3063_s1] sm:$0xff] (!%p164_p2)  ;;  %s1879_s19 = sshll.u32 (!%p164_p2), %s1874_s16, 7  ;;  %vm330_vm0 = vcmask (!%p164_p2), 64512  }
   0x6   : > { %167 = sbr.rel (%p164_p2) target bundleno = 361 (0x169), region = 36  ;;  %2144 = vmatprep.subr.mxu0 (!%p164_p2), %v329_v0  ;;  %2338 = vmatprep.subr.mxu1 (!%p164_p2), %v329_v0  ;;  %p190_p3 = scmp.lt.s32.totalorder (!%p164_p2), %s1879_s19, 255 }
   0x7   : > { %2145 = vmatpush3.msra.mxu0 (!%p164_p2), %v329_v0  ;;  %2339 = vmatpush3.msra.mxu1 (!%p164_p2), %v329_v0 }
   0xd   : > { %s3068_s19 = smov (!%p190_p3, %s1879_s19), 255 }
   0xe   : > { %s1880_s20 = sshll.u32 %s3068_s19, 3 }
   0xf   : > { %s2400_s23 = scalar_lea.vmem %s3062_s0, %s1880_s20  ;;  %s2675_s30 = scalar_lea.vmem %s3066_s4, %s1880_s20 }
  0x10   : > { %v201_v1 = vld [vmem:[%s2400_s23] sm:$0xff]  ;;  %v202_v3 = vld [vmem:[%s2400_s23 + $0x8] sm:$0xff]  ;;  %v203_v5 = vld [vmem:[%s2400_s23 + $0x10] sm:$0xff] }
  0x11   : > { %v265_v2 = vld [vmem:[%s2400_s23 + $0x200] sm:$0xff]  ;;  %2146 = vmatprep.mubr.msk.f32.mxu0 %vm330_vm0, %v201_v1  ;;  %v266_v4 = vld [vmem:[%s2400_s23 + $0x208] sm:$0xff]  ;;  %v267_v6 = vld [vmem:[%s2400_s23 + $0x210] sm:$0xff] }
  0x12   : > { %2242 = vmatprep.mubr.msk.f32.mxu1 %vm330_vm0, %v265_v2  ;;  %2147 = vmatmul.mubr.msk.f32.vlgmr.msra.gmra.mrb[0].mxu0 %vm330_vm0, %v202_v3  ;;  %v204_v7 = vld [vmem:[%s2400_s23 + $0x18] sm:$0xff]  ;;  %v205_v9 = vld [vmem:[%s2400_s23 + $0x20] sm:$0xff]  ;;  %v206_v11 = vld [vmem:[%s2400_s23 + $0x28] sm:$0xff] }
  0x13   : > { %2243 = vmatmul.mubr.msk.f32.vlgmr.msra.gmra.mrb[0].mxu1 %vm330_vm0, %v266_v4  ;;  %2149 = vmatprep.mubr.msk.f32.mxu0 %vm330_vm0, %v203_v5  ;;  %v268_v8 = vld [vmem:[%s2400_s23 + $0x218] sm:$0xff]  ;;  %v269_v10 = vld [vmem:[%s2400_s23 + $0x220] sm:$0xff]  ;;  %v270_v12 = vld [vmem:[%s2400_s23 + $0x228] sm:$0xff] }
  0x14   : > { %2245 = vmatprep.mubr.msk.f32.mxu1 %vm330_vm0, %v267_v6  ;;  %v207_v13 = vld [vmem:[%s2400_s23 + $0x30] sm:$0xff]  ;;  %v208_v15 = vld [vmem:[%s2400_s23 + $0x38] sm:$0xff]  ;;  %v209_v17 = vld [vmem:[%s2400_s23 + $0x40] sm:$0xff] }
  0x15   : > { %v271_v14 = vld [vmem:[%s2400_s23 + $0x230] sm:$0xff]  ;;  %v272_v16 = vld [vmem:[%s2400_s23 + $0x238] sm:$0xff]  ;;  %v273_v18 = vld [vmem:[%s2400_s23 + $0x240] sm:$0xff] }
  0x16   : > { %2150 = vmatmul.mubr.msk.f32.gmra.mrb[2].mxu0 %vm330_vm0, %v204_v7  ;;  %v210_v19 = vld [vmem:[%s2400_s23 + $0x48] sm:$0xff]  ;;  %v211_v21 = vld [vmem:[%s2400_s23 + $0x50] sm:$0xff]  ;;  %v212_v23 = vld [vmem:[%s2400_s23 + $0x58] sm:$0xff] }
  0x17   : > { %2246 = vmatmul.mubr.msk.f32.gmra.mrb[2].mxu1 %vm330_vm0, %v268_v8  ;;  %2152 = vmatprep.mubr.msk.f32.mxu0 %vm330_vm0, %v205_v9  ;;  %v274_v20 = vld [vmem:[%s2400_s23 + $0x248] sm:$0xff]  ;;  %v275_v22 = vld [vmem:[%s2400_s23 + $0x250] sm:$0xff]  ;;  %v276_v24 = vld [vmem:[%s2400_s23 + $0x258] sm:$0xff] }
  0x18   : > { %2248 = vmatprep.mubr.msk.f32.mxu1 %vm330_vm0, %v269_v10  ;;  %v213_v25 = vld [vmem:[%s2400_s23 + $0x60] sm:$0xff]  ;;  %v214_v27 = vld [vmem:[%s2400_s23 + $0x68] sm:$0xff]  ;;  %v215_v29 = vld [vmem:[%s2400_s23 + $0x70] sm:$0xff] }
  0x19   : > { %v277_v26 = vld [vmem:[%s2400_s23 + $0x260] sm:$0xff]  ;;  %v278_v28 = vld [vmem:[%s2400_s23 + $0x268] sm:$0xff]  ;;  %v279_v30 = vld [vmem:[%s2400_s23 + $0x270] sm:$0xff] }
  0x1a   : > { %2153 = vmatmul.mubr.msk.f32.gmra.mrb[4].mxu0 %vm330_vm0, %v206_v11  ;;  %v216_v31 = vld [vmem:[%s2400_s23 + $0x78] sm:$0xff]  ;;  %v217_v33 = vld [vmem:[%s2400_s23 + $0x80] sm:$0xff]  ;;  %v218_v35 = vld [vmem:[%s2400_s23 + $0x88] sm:$0xff] }
  0x1b   : > { %2249 = vmatmul.mubr.msk.f32.gmra.mrb[4].mxu1 %vm330_vm0, %v270_v12  ;;  %2155 = vmatprep.mubr.msk.f32.mxu0 %vm330_vm0, %v207_v13  ;;  %v280_v32 = vld [vmem:[%s2400_s23 + $0x278] sm:$0xff]  ;;  %v281_v34 = vld [vmem:[%s2400_s23 + $0x280] sm:$0xff]  ;;  %v282_v36 = vld [vmem:[%s2400_s23 + $0x288] sm:$0xff] }
  0x1c   : > { %2251 = vmatprep.mubr.msk.f32.mxu1 %vm330_vm0, %v271_v14  ;;  %v219_v37 = vld [vmem:[%s2400_s23 + $0x90] sm:$0xff]  ;;  %v220_v39 = vld [vmem:[%s2400_s23 + $0x98] sm:$0xff]  ;;  %v221_v41 = vld [vmem:[%s2400_s23 + $0xa0] sm:$0xff] }
  0x1d   : > { %v283_v38 = vld [vmem:[%s2400_s23 + $0x290] sm:$0xff]  ;;  %v284_v40 = vld [vmem:[%s2400_s23 + $0x298] sm:$0xff]  ;;  %v285_v42 = vld [vmem:[%s2400_s23 + $0x2a0] sm:$0xff] }
  0x1e   : > { %2156 = vmatmul.mubr.msk.f32.gmra.mrb[6].mxu0 %vm330_vm0, %v208_v15  ;;  %v222_v43 = vld [vmem:[%s2400_s23 + $0xa8] sm:$0xff]  ;;  %v223_v45 = vld [vmem:[%s2400_s23 + $0xb0] sm:$0xff]  ;;  %v224_v47 = vld [vmem:[%s2400_s23 + $0xb8] sm:$0xff] }
  0x1f   : > { %2252 = vmatmul.mubr.msk.f32.gmra.mrb[6].mxu1 %vm330_vm0, %v272_v16  ;;  %2158 = vmatprep.mubr.msk.f32.mxu0 %vm330_vm0, %v209_v17  ;;  %v286_v44 = vld [vmem:[%s2400_s23 + $0x2a8] sm:$0xff]  ;;  %v287_v46 = vld [vmem:[%s2400_s23 + $0x2b0] sm:$0xff]  ;;  %v288_v48 = vld [vmem:[%s2400_s23 + $0x2b8] sm:$0xff] }
  0x20   : > { %2254 = vmatprep.mubr.msk.f32.mxu1 %vm330_vm0, %v273_v18  ;;  %v225_v49 = vld [vmem:[%s2400_s23 + $0xc0] sm:$0xff]  ;;  %v226_v51 = vld [vmem:[%s2400_s23 + $0xc8] sm:$0xff]  ;;  %v227_v53 = vld [vmem:[%s2400_s23 + $0xd0] sm:$0xff] }
  0x21   : > { %v289_v50 = vld [vmem:[%s2400_s23 + $0x2c0] sm:$0xff]  ;;  %v290_v52 = vld [vmem:[%s2400_s23 + $0x2c8] sm:$0xff]  ;;  %v291_v54 = vld [vmem:[%s2400_s23 + $0x2d0] sm:$0xff] }
  0x22   : > { %2159 = vmatmul.mubr.msk.f32.gmra.mrb[8].mxu0 %vm330_vm0, %v210_v19  ;;  %v228_v55 = vld [vmem:[%s2400_s23 + $0xd8] sm:$0xff]  ;;  %v229_v57 = vld [vmem:[%s2400_s23 + $0xe0] sm:$0xff]  ;;  %v230_v59 = vld [vmem:[%s2400_s23 + $0xe8] sm:$0xff] }
  0x23   : > { %2255 = vmatmul.mubr.msk.f32.gmra.mrb[8].mxu1 %vm330_vm0, %v274_v20  ;;  %2161 = vmatprep.mubr.msk.f32.mxu0 %vm330_vm0, %v211_v21  ;;  %v292_v56 = vld [vmem:[%s2400_s23 + $0x2d8] sm:$0xff]  ;;  %v293_v58 = vld [vmem:[%s2400_s23 + $0x2e0] sm:$0xff]  ;;  %v294_v60 = vld [vmem:[%s2400_s23 + $0x2e8] sm:$0xff] }
  0x24   : > { %2257 = vmatprep.mubr.msk.f32.mxu1 %vm330_vm0, %v275_v22  ;;  %v231_v61 = vld [vmem:[%s2400_s23 + $0xf0] sm:$0xff]  ;;  %v232_v63 = vld [vmem:[%s2400_s23 + $0xf8] sm:$0xff]  ;;  %v233_v1 = vld [vmem:[%s2400_s23 + $0x100] sm:$0xff] }
  0x25   : > { %v295_v62 = vld [vmem:[%s2400_s23 + $0x2f0] sm:$0xff]  ;;  %v296_v0 = vld [vmem:[%s2400_s23 + $0x2f8] sm:$0xff]  ;;  %v297_v2 = vld [vmem:[%s2400_s23 + $0x300] sm:$0xff] }
  0x26   : > { %2162 = vmatmul.mubr.msk.f32.gmra.mrb[10].mxu0 %vm330_vm0, %v212_v23  ;;  %v234_v3 = vld [vmem:[%s2400_s23 + $0x108] sm:$0xff]  ;;  %v235_v5 = vld [vmem:[%s2400_s23 + $0x110] sm:$0xff]  ;;  %v236_v7 = vld [vmem:[%s2400_s23 + $0x118] sm:$0xff] }
  0x27   : > { %2258 = vmatmul.mubr.msk.f32.gmra.mrb[10].mxu1 %vm330_vm0, %v276_v24  ;;  %2164 = vmatprep.mubr.msk.f32.mxu0 %vm330_vm0, %v213_v25  ;;  %v298_v4 = vld [vmem:[%s2400_s23 + $0x308] sm:$0xff]  ;;  %v299_v6 = vld [vmem:[%s2400_s23 + $0x310] sm:$0xff]  ;;  %v300_v8 = vld [vmem:[%s2400_s23 + $0x318] sm:$0xff] }
  0x28   : > { %2260 = vmatprep.mubr.msk.f32.mxu1 %vm330_vm0, %v277_v26  ;;  %v237_v9 = vld [vmem:[%s2400_s23 + $0x120] sm:$0xff]  ;;  %v238_v11 = vld [vmem:[%s2400_s23 + $0x128] sm:$0xff]  ;;  %v239_v13 = vld [vmem:[%s2400_s23 + $0x130] sm:$0xff] }
  0x29   : > { %v301_v10 = vld [vmem:[%s2400_s23 + $0x320] sm:$0xff]  ;;  %v302_v12 = vld [vmem:[%s2400_s23 + $0x328] sm:$0xff]  ;;  %v303_v14 = vld [vmem:[%s2400_s23 + $0x330] sm:$0xff] }
  0x2a   : > { %2165 = vmatmul.mubr.msk.f32.gmra.mrb[12].mxu0 %vm330_vm0, %v214_v27  ;;  %v240_v15 = vld [vmem:[%s2400_s23 + $0x138] sm:$0xff]  ;;  %v241_v17 = vld [vmem:[%s2400_s23 + $0x140] sm:$0xff]  ;;  %v242_v19 = vld [vmem:[%s2400_s23 + $0x148] sm:$0xff] }
  0x2b   : > { %2261 = vmatmul.mubr.msk.f32.gmra.mrb[12].mxu1 %vm330_vm0, %v278_v28  ;;  %2167 = vmatprep.mubr.msk.f32.mxu0 %vm330_vm0, %v215_v29  ;;  %v304_v16 = vld [vmem:[%s2400_s23 + $0x338] sm:$0xff]  ;;  %v305_v18 = vld [vmem:[%s2400_s23 + $0x340] sm:$0xff]  ;;  %v306_v20 = vld [vmem:[%s2400_s23 + $0x348] sm:$0xff] }
  0x2c   : > { %2263 = vmatprep.mubr.msk.f32.mxu1 %vm330_vm0, %v279_v30  ;;  %v243_v21 = vld [vmem:[%s2400_s23 + $0x150] sm:$0xff]  ;;  %v244_v23 = vld [vmem:[%s2400_s23 + $0x158] sm:$0xff]  ;;  %v245_v25 = vld [vmem:[%s2400_s23 + $0x160] sm:$0xff] }
  0x2d   : > { %v307_v22 = vld [vmem:[%s2400_s23 + $0x350] sm:$0xff]  ;;  %v308_v24 = vld [vmem:[%s2400_s23 + $0x358] sm:$0xff]  ;;  %v309_v26 = vld [vmem:[%s2400_s23 + $0x360] sm:$0xff] }
  0x2e   : > { %2168 = vmatmul.mubr.msk.f32.gmra.mrb[14].mxu0 %vm330_vm0, %v216_v31  ;;  %v246_v27 = vld [vmem:[%s2400_s23 + $0x168] sm:$0xff]  ;;  %v247_v29 = vld [vmem:[%s2400_s23 + $0x170] sm:$0xff]  ;;  %v248_v31 = vld [vmem:[%s2400_s23 + $0x178] sm:$0xff] }
  0x2f   : > { %2264 = vmatmul.mubr.msk.f32.gmra.mrb[14].mxu1 %vm330_vm0, %v280_v32  ;;  %2170 = vmatprep.mubr.msk.f32.mxu0 %vm330_vm0, %v217_v33  ;;  %v310_v28 = vld [vmem:[%s2400_s23 + $0x368] sm:$0xff]  ;;  %v311_v30 = vld [vmem:[%s2400_s23 + $0x370] sm:$0xff]  ;;  %v312_v32 = vld [vmem:[%s2400_s23 + $0x378] sm:$0xff] }
  0x30   : > { %2266 = vmatprep.mubr.msk.f32.mxu1 %vm330_vm0, %v281_v34  ;;  %v249_v33 = vld [vmem:[%s2400_s23 + $0x180] sm:$0xff] }
  0x31   : > { %v313_v34 = vld [vmem:[%s2400_s23 + $0x380] sm:$0xff] }
  0x32   : > { %2171 = vmatmul.mubr.msk.f32.gmra.mrb[16].mxu0 %vm330_vm0, %v218_v35  ;;  %v250_v35 = vld [vmem:[%s2400_s23 + $0x188] sm:$0xff] }
  0x33   : > { %2267 = vmatmul.mubr.msk.f32.gmra.mrb[16].mxu1 %vm330_vm0, %v282_v36  ;;  %2173 = vmatprep.mubr.msk.f32.mxu0 %vm330_vm0, %v219_v37  ;;  %v314_v36 = vld [vmem:[%s2400_s23 + $0x388] sm:$0xff]  ;;  %v251_v37 = vld [vmem:[%s2400_s23 + $0x190] sm:$0xff] }
  0x34   : > { %2269 = vmatprep.mubr.msk.f32.mxu1 %vm330_vm0, %v283_v38  ;;  %v315_v38 = vld [vmem:[%s2400_s23 + $0x390] sm:$0xff] }
  0x36   : > { %2174 = vmatmul.mubr.msk.f32.gmra.mrb[18].mxu0 %vm330_vm0, %v220_v39  ;;  %v252_v39 = vld [vmem:[%s2400_s23 + $0x198] sm:$0xff] }
  0x37   : > { %2270 = vmatmul.mubr.msk.f32.gmra.mrb[18].mxu1 %vm330_vm0, %v284_v40  ;;  %2176 = vmatprep.mubr.msk.f32.mxu0 %vm330_vm0, %v221_v41  ;;  %v316_v40 = vld [vmem:[%s2400_s23 + $0x398] sm:$0xff]  ;;  %v253_v41 = vld [vmem:[%s2400_s23 + $0x1a0] sm:$0xff] }
  0x38   : > { %2272 = vmatprep.mubr.msk.f32.mxu1 %vm330_vm0, %v285_v42  ;;  %v317_v42 = vld [vmem:[%s2400_s23 + $0x3a0] sm:$0xff] }
  0x3a   : > { %2177 = vmatmul.mubr.msk.f32.gmra.mrb[20].mxu0 %vm330_vm0, %v222_v43  ;;  %v254_v43 = vld [vmem:[%s2400_s23 + $0x1a8] sm:$0xff] }
  0x3b   : > { %2273 = vmatmul.mubr.msk.f32.gmra.mrb[20].mxu1 %vm330_vm0, %v286_v44  ;;  %2179 = vmatprep.mubr.msk.f32.mxu0 %vm330_vm0, %v223_v45  ;;  %v318_v44 = vld [vmem:[%s2400_s23 + $0x3a8] sm:$0xff]  ;;  %v255_v45 = vld [vmem:[%s2400_s23 + $0x1b0] sm:$0xff] }
  0x3c   : > { %2275 = vmatprep.mubr.msk.f32.mxu1 %vm330_vm0, %v287_v46  ;;  %v319_v46 = vld [vmem:[%s2400_s23 + $0x3b0] sm:$0xff] }
  0x3e   : > { %2180 = vmatmul.mubr.msk.f32.gmra.mrb[22].mxu0 %vm330_vm0, %v224_v47  ;;  %v256_v47 = vld [vmem:[%s2400_s23 + $0x1b8] sm:$0xff] }
  0x3f   : > { %2276 = vmatmul.mubr.msk.f32.gmra.mrb[22].mxu1 %vm330_vm0, %v288_v48  ;;  %2182 = vmatprep.mubr.msk.f32.mxu0 %vm330_vm0, %v225_v49  ;;  %v320_v48 = vld [vmem:[%s2400_s23 + $0x3b8] sm:$0xff]  ;;  %v257_v49 = vld [vmem:[%s2400_s23 + $0x1c0] sm:$0xff] }
  0x40   : > { %2278 = vmatprep.mubr.msk.f32.mxu1 %vm330_vm0, %v289_v50  ;;  %v321_v50 = vld [vmem:[%s2400_s23 + $0x3c0] sm:$0xff] }
  0x42   : > { %2183 = vmatmul.mubr.msk.f32.gmra.mrb[24].mxu0 %vm330_vm0, %v226_v51  ;;  %v258_v51 = vld [vmem:[%s2400_s23 + $0x1c8] sm:$0xff] }
  0x43   : > { %2279 = vmatmul.mubr.msk.f32.gmra.mrb[24].mxu1 %vm330_vm0, %v290_v52  ;;  %2185 = vmatprep.mubr.msk.f32.mxu0 %vm330_vm0, %v227_v53  ;;  %v322_v52 = vld [vmem:[%s2400_s23 + $0x3c8] sm:$0xff]  ;;  %v259_v53 = vld [vmem:[%s2400_s23 + $0x1d0] sm:$0xff] }
  0x44   : > { %2281 = vmatprep.mubr.msk.f32.mxu1 %vm330_vm0, %v291_v54  ;;  %v323_v54 = vld [vmem:[%s2400_s23 + $0x3d0] sm:$0xff] }
  0x46   : > { %2186 = vmatmul.mubr.msk.f32.gmra.mrb[26].mxu0 %vm330_vm0, %v228_v55  ;;  %v260_v55 = vld [vmem:[%s2400_s23 + $0x1d8] sm:$0xff] }
  0x47   : > { %2282 = vmatmul.mubr.msk.f32.gmra.mrb[26].mxu1 %vm330_vm0, %v292_v56  ;;  %2188 = vmatprep.mubr.msk.f32.mxu0 %vm330_vm0, %v229_v57  ;;  %v324_v56 = vld [vmem:[%s2400_s23 + $0x3d8] sm:$0xff]  ;;  %v261_v57 = vld [vmem:[%s2400_s23 + $0x1e0] sm:$0xff] }
  0x48   : > { %2284 = vmatprep.mubr.msk.f32.mxu1 %vm330_vm0, %v293_v58  ;;  %v325_v58 = vld [vmem:[%s2400_s23 + $0x3e0] sm:$0xff] }
  0x4a   : > { %2189 = vmatmul.mubr.msk.f32.gmra.mrb[28].mxu0 %vm330_vm0, %v230_v59  ;;  %v262_v59 = vld [vmem:[%s2400_s23 + $0x1e8] sm:$0xff] }
  0x4b   : > { %2285 = vmatmul.mubr.msk.f32.gmra.mrb[28].mxu1 %vm330_vm0, %v294_v60  ;;  %2191 = vmatprep.mubr.msk.f32.mxu0 %vm330_vm0, %v231_v61  ;;  %v326_v60 = vld [vmem:[%s2400_s23 + $0x3e8] sm:$0xff]  ;;  %v263_v61 = vld [vmem:[%s2400_s23 + $0x1f0] sm:$0xff] }
  0x4c   : > { %2287 = vmatprep.mubr.msk.f32.mxu1 %vm330_vm0, %v295_v62  ;;  %v327_v62 = vld [vmem:[%s2400_s23 + $0x3f0] sm:$0xff] }
  0x4e   : > { %2192 = vmatmul.mubr.msk.f32.gmra.mrb[30].mxu0 %vm330_vm0, %v232_v63  ;;  %v264_v63 = vld [vmem:[%s2400_s23 + $0x1f8] sm:$0xff] }
  0x4f   : > { %2288 = vmatmul.mubr.msk.f32.gmra.mrb[30].mxu1 %vm330_vm0, %v296_v0  ;;  %2194 = vmatprep.mubr.msk.f32.mxu0 %vm330_vm0, %v233_v1  ;;  %v328_v0 = vld [vmem:[%s2400_s23 + $0x3f8] sm:$0xff]  ;;  %v2661_v1 = vld [vmem:[%s3064_s2] ss:$0 sm:$0xff] }
  0x50   : > { %2290 = vmatprep.mubr.msk.f32.mxu1 %vm330_vm0, %v297_v2 }
  0x52   : > { %2195 = vmatmul.mubr.msk.f32.gmra.mrb[32].mxu0 %vm330_vm0, %v234_v3  ;;  %v2666_v3 = vld [vmem:[%s3065_s3] ss:$0 sm:$0xff] }
  0x53   : > { %2291 = vmatmul.mubr.msk.f32.gmra.mrb[32].mxu1 %vm330_vm0, %v298_v4  ;;  %2197 = vmatprep.mubr.msk.f32.mxu0 %vm330_vm0, %v235_v5 }
  0x54   : > { %2293 = vmatprep.mubr.msk.f32.mxu1 %vm330_vm0, %v299_v6 }
  0x56   : > { %2198 = vmatmul.mubr.msk.f32.gmra.mrb[34].mxu0 %vm330_vm0, %v236_v7 }
  0x57   : > { %2294 = vmatmul.mubr.msk.f32.gmra.mrb[34].mxu1 %vm330_vm0, %v300_v8  ;;  %2200 = vmatprep.mubr.msk.f32.mxu0 %vm330_vm0, %v237_v9 }
  0x58   : > { %2296 = vmatprep.mubr.msk.f32.mxu1 %vm330_vm0, %v301_v10 }
  0x5a   : > { %2201 = vmatmul.mubr.msk.f32.gmra.mrb[36].mxu0 %vm330_vm0, %v238_v11 }
  0x5b   : > { %2297 = vmatmul.mubr.msk.f32.gmra.mrb[36].mxu1 %vm330_vm0, %v302_v12  ;;  %2203 = vmatprep.mubr.msk.f32.mxu0 %vm330_vm0, %v239_v13 }
  0x5c   : > { %2299 = vmatprep.mubr.msk.f32.mxu1 %vm330_vm0, %v303_v14 }
  0x5e   : > { %2204 = vmatmul.mubr.msk.f32.gmra.mrb[38].mxu0 %vm330_vm0, %v240_v15 }
  0x5f   : > { %2300 = vmatmul.mubr.msk.f32.gmra.mrb[38].mxu1 %vm330_vm0, %v304_v16  ;;  %2206 = vmatprep.mubr.msk.f32.mxu0 %vm330_vm0, %v241_v17 }
  0x60   : > { %2302 = vmatprep.mubr.msk.f32.mxu1 %vm330_vm0, %v305_v18 }
  0x62   : > { %2207 = vmatmul.mubr.msk.f32.gmra.mrb[40].mxu0 %vm330_vm0, %v242_v19 }
  0x63   : > { %2303 = vmatmul.mubr.msk.f32.gmra.mrb[40].mxu1 %vm330_vm0, %v306_v20  ;;  %2209 = vmatprep.mubr.msk.f32.mxu0 %vm330_vm0, %v243_v21 }
  0x64   : > { %2305 = vmatprep.mubr.msk.f32.mxu1 %vm330_vm0, %v307_v22 }
  0x66   : > { %2210 = vmatmul.mubr.msk.f32.gmra.mrb[42].mxu0 %vm330_vm0, %v244_v23 }
  0x67   : > { %2306 = vmatmul.mubr.msk.f32.gmra.mrb[42].mxu1 %vm330_vm0, %v308_v24  ;;  %2212 = vmatprep.mubr.msk.f32.mxu0 %vm330_vm0, %v245_v25 }
  0x68   : > { %2308 = vmatprep.mubr.msk.f32.mxu1 %vm330_vm0, %v309_v26 }
  0x6a   : > { %2213 = vmatmul.mubr.msk.f32.gmra.mrb[44].mxu0 %vm330_vm0, %v246_v27 }
  0x6b   : > { %2309 = vmatmul.mubr.msk.f32.gmra.mrb[44].mxu1 %vm330_vm0, %v310_v28  ;;  %2215 = vmatprep.mubr.msk.f32.mxu0 %vm330_vm0, %v247_v29 }
  0x6c   : > { %2311 = vmatprep.mubr.msk.f32.mxu1 %vm330_vm0, %v311_v30 }
  0x6e   : > { %2216 = vmatmul.mubr.msk.f32.gmra.mrb[46].mxu0 %vm330_vm0, %v248_v31 }
  0x6f   : > { %2312 = vmatmul.mubr.msk.f32.gmra.mrb[46].mxu1 %vm330_vm0, %v312_v32  ;;  %2218 = vmatprep.mubr.msk.f32.mxu0 %vm330_vm0, %v249_v33 }
  0x70   : > { %2314 = vmatprep.mubr.msk.f32.mxu1 %vm330_vm0, %v313_v34 }
  0x72   : > { %2219 = vmatmul.mubr.msk.f32.gmra.mrb[48].mxu0 %vm330_vm0, %v250_v35 }
  0x73   : > { %2315 = vmatmul.mubr.msk.f32.gmra.mrb[48].mxu1 %vm330_vm0, %v314_v36  ;;  %2221 = vmatprep.mubr.msk.f32.mxu0 %vm330_vm0, %v251_v37 }
  0x74   : > { %2317 = vmatprep.mubr.msk.f32.mxu1 %vm330_vm0, %v315_v38 }
  0x76   : > { %2222 = vmatmul.mubr.msk.f32.gmra.mrb[50].mxu0 %vm330_vm0, %v252_v39 }
  0x77   : > { %2318 = vmatmul.mubr.msk.f32.gmra.mrb[50].mxu1 %vm330_vm0, %v316_v40  ;;  %2224 = vmatprep.mubr.msk.f32.mxu0 %vm330_vm0, %v253_v41 }
  0x78   : > { %2320 = vmatprep.mubr.msk.f32.mxu1 %vm330_vm0, %v317_v42 }
  0x7a   : > { %2225 = vmatmul.mubr.msk.f32.gmra.mrb[52].mxu0 %vm330_vm0, %v254_v43 }
  0x7b   : > { %2321 = vmatmul.mubr.msk.f32.gmra.mrb[52].mxu1 %vm330_vm0, %v318_v44  ;;  %2227 = vmatprep.mubr.msk.f32.mxu0 %vm330_vm0, %v255_v45 }
  0x7c   : > { %2323 = vmatprep.mubr.msk.f32.mxu1 %vm330_vm0, %v319_v46 }
  0x7e   : > { %2228 = vmatmul.mubr.msk.f32.gmra.mrb[54].mxu0 %vm330_vm0, %v256_v47 }
  0x7f   : > { %2324 = vmatmul.mubr.msk.f32.gmra.mrb[54].mxu1 %vm330_vm0, %v320_v48  ;;  %2230 = vmatprep.mubr.msk.f32.mxu0 %vm330_vm0, %v257_v49 }
  0x80   : > { %2326 = vmatprep.mubr.msk.f32.mxu1 %vm330_vm0, %v321_v50 }
  0x82   : > { %2231 = vmatmul.mubr.msk.f32.gmra.mrb[56].mxu0 %vm330_vm0, %v258_v51 }
  0x83   : > { %2327 = vmatmul.mubr.msk.f32.gmra.mrb[56].mxu1 %vm330_vm0, %v322_v52  ;;  %2233 = vmatprep.mubr.msk.f32.mxu0 %vm330_vm0, %v259_v53 }
  0x84   : > { %2329 = vmatprep.mubr.msk.f32.mxu1 %vm330_vm0, %v323_v54 }
  0x86   : > { %2234 = vmatmul.mubr.msk.f32.gmra.mrb[58].mxu0 %vm330_vm0, %v260_v55 }
  0x87   : > { %2330 = vmatmul.mubr.msk.f32.gmra.mrb[58].mxu1 %vm330_vm0, %v324_v56  ;;  %2236 = vmatprep.mubr.msk.f32.mxu0 %vm330_vm0, %v261_v57 }
  0x88   : > { %2332 = vmatprep.mubr.msk.f32.mxu1 %vm330_vm0, %v325_v58 }
  0x8a   : > { %2237 = vmatmul.mubr.msk.f32.gmra.mrb[60].mxu0 %vm330_vm0, %v262_v59 }
  0x8b   : > { %2333 = vmatmul.mubr.msk.f32.gmra.mrb[60].mxu1 %vm330_vm0, %v326_v60  ;;  %2239 = vmatprep.mubr.msk.f32.mxu0 %vm330_vm0, %v263_v61 }
  0x8c   : > { %2335 = vmatprep.mubr.msk.f32.mxu1 %vm330_vm0, %v327_v62 }
  0x8e   : > { %2240 = vmatmul.mubr.msk.f32.gmra.mrb[62].mxu0 %vm330_vm0, %v264_v63 }
  0x8f   : > { %2336 = vmatmul.mubr.msk.f32.gmra.mrb[62].mxu1 %vm330_vm0, %v328_v0 }
  0xe5   : > { %v2148_v2 = vpop.f32.mrb[0].mxu0 }
  0xe6   : > { %v2244_v4 = vpop.f32.mrb[0].mxu1  ;;  %v1428_v5 = vmul.f32 %v2148_v2, %v2661_v1  ;;  %v781_v7 = vpop.f32.mrb[1].mxu0 }
  0xe7   : > { %v1492_v6 = vmul.f32 %v2244_v4, %v2661_v1  ;;  %v1101_v8 = vpop.f32.mrb[1].mxu1  ;;  %v1427_v9 = vmul.f32 %v2661_v1, %v781_v7 }
  0xe8   : > { %v1491_v10 = vmul.f32 %v2661_v1, %v1101_v8  ;;  %v1563_v11 = vadd.f32 %v2666_v3, %v1428_v5 }
  0xe9   : > { %v1627_v12 = vadd.f32 %v2666_v3, %v1492_v6  ;;  %v1562_v13 = vadd.f32 %v2666_v3, %v1427_v9  ;;  %v2151_v15 = vpop.f32.mrb[2].mxu0 }
  0xea   : > { %v1626_v14 = vadd.f32 %v2666_v3, %v1491_v10  ;;  %v2247_v16 = vpop.f32.mrb[2].mxu1  ;;  %1691 = vst [vmem:[%s2675_s30 + $0x8] sm:$0xff] %v1563_v11  ;;  %v1430_v17 = vmul.f32 %v2151_v15, %v2661_v1  ;;  %v791_v19 = vpop.f32.mrb[3].mxu0 }
  0xeb   : > { %1755 = vst [vmem:[%s2675_s30 + $0x208] sm:$0xff] %v1627_v12  ;;  %v1494_v18 = vmul.f32 %v2247_v16, %v2661_v1  ;;  %v1111_v20 = vpop.f32.mrb[3].mxu1  ;;  %1690 = vst [vmem:[%s2675_s30] sm:$0xff] %v1562_v13  ;;  %v1429_v21 = vmul.f32 %v2661_v1, %v791_v19 }
  0xec   : > { %1754 = vst [vmem:[%s2675_s30 + $0x200] sm:$0xff] %v1626_v14  ;;  %v1493_v22 = vmul.f32 %v2661_v1, %v1111_v20  ;;  %v1565_v23 = vadd.f32 %v2666_v3, %v1430_v17 }
  0xed   : > { %v1629_v24 = vadd.f32 %v2666_v3, %v1494_v18  ;;  %v1564_v25 = vadd.f32 %v2666_v3, %v1429_v21  ;;  %v2154_v27 = vpop.f32.mrb[4].mxu0 }
  0xee   : > { %v1628_v26 = vadd.f32 %v2666_v3, %v1493_v22  ;;  %v2250_v28 = vpop.f32.mrb[4].mxu1  ;;  %1693 = vst [vmem:[%s2675_s30 + $0x18] sm:$0xff] %v1565_v23  ;;  %v1432_v29 = vmul.f32 %v2154_v27, %v2661_v1  ;;  %v801_v31 = vpop.f32.mrb[5].mxu0 }
  0xef   : > { %1757 = vst [vmem:[%s2675_s30 + $0x218] sm:$0xff] %v1629_v24  ;;  %v1496_v30 = vmul.f32 %v2250_v28, %v2661_v1  ;;  %v1121_v32 = vpop.f32.mrb[5].mxu1  ;;  %1692 = vst [vmem:[%s2675_s30 + $0x10] sm:$0xff] %v1564_v25  ;;  %v1431_v33 = vmul.f32 %v2661_v1, %v801_v31 }
  0xf0   : > { %1756 = vst [vmem:[%s2675_s30 + $0x210] sm:$0xff] %v1628_v26  ;;  %v1495_v34 = vmul.f32 %v2661_v1, %v1121_v32  ;;  %v1567_v35 = vadd.f32 %v2666_v3, %v1432_v29 }
  0xf1   : > { %v1631_v36 = vadd.f32 %v2666_v3, %v1496_v30  ;;  %v1566_v37 = vadd.f32 %v2666_v3, %v1431_v33  ;;  %v2157_v39 = vpop.f32.mrb[6].mxu0 }
  0xf2   : > { %v1630_v38 = vadd.f32 %v2666_v3, %v1495_v34  ;;  %v2253_v40 = vpop.f32.mrb[6].mxu1  ;;  %1695 = vst [vmem:[%s2675_s30 + $0x28] sm:$0xff] %v1567_v35  ;;  %v1434_v41 = vmul.f32 %v2157_v39, %v2661_v1  ;;  %v811_v43 = vpop.f32.mrb[7].mxu0 }
  0xf3   : > { %1759 = vst [vmem:[%s2675_s30 + $0x228] sm:$0xff] %v1631_v36  ;;  %v1498_v42 = vmul.f32 %v2253_v40, %v2661_v1  ;;  %v1131_v44 = vpop.f32.mrb[7].mxu1  ;;  %1694 = vst [vmem:[%s2675_s30 + $0x20] sm:$0xff] %v1566_v37  ;;  %v1433_v45 = vmul.f32 %v2661_v1, %v811_v43 }
  0xf4   : > { %1758 = vst [vmem:[%s2675_s30 + $0x220] sm:$0xff] %v1630_v38  ;;  %v1497_v46 = vmul.f32 %v2661_v1, %v1131_v44  ;;  %v1569_v47 = vadd.f32 %v2666_v3, %v1434_v41 }
  0xf5   : > { %v1633_v48 = vadd.f32 %v2666_v3, %v1498_v42  ;;  %v1568_v49 = vadd.f32 %v2666_v3, %v1433_v45  ;;  %v2160_v51 = vpop.f32.mrb[8].mxu0 }
  0xf6   : > { %v1632_v50 = vadd.f32 %v2666_v3, %v1497_v46  ;;  %v2256_v52 = vpop.f32.mrb[8].mxu1  ;;  %1697 = vst [vmem:[%s2675_s30 + $0x38] sm:$0xff] %v1569_v47  ;;  %v1436_v53 = vmul.f32 %v2160_v51, %v2661_v1  ;;  %v821_v55 = vpop.f32.mrb[9].mxu0 }
  0xf7   : > { %1761 = vst [vmem:[%s2675_s30 + $0x238] sm:$0xff] %v1633_v48  ;;  %v1500_v54 = vmul.f32 %v2256_v52, %v2661_v1  ;;  %v1141_v56 = vpop.f32.mrb[9].mxu1  ;;  %1696 = vst [vmem:[%s2675_s30 + $0x30] sm:$0xff] %v1568_v49  ;;  %v1435_v57 = vmul.f32 %v2661_v1, %v821_v55 }
  0xf8   : > { %1760 = vst [vmem:[%s2675_s30 + $0x230] sm:$0xff] %v1632_v50  ;;  %v1499_v58 = vmul.f32 %v2661_v1, %v1141_v56  ;;  %v1571_v59 = vadd.f32 %v2666_v3, %v1436_v53 }
  0xf9   : > { %v1635_v60 = vadd.f32 %v2666_v3, %v1500_v54  ;;  %v1570_v61 = vadd.f32 %v2666_v3, %v1435_v57  ;;  %v2163_v63 = vpop.f32.mrb[10].mxu0 }
  0xfa   : > { %v1634_v62 = vadd.f32 %v2666_v3, %v1499_v58  ;;  %v2259_v0 = vpop.f32.mrb[10].mxu1  ;;  %1699 = vst [vmem:[%s2675_s30 + $0x48] sm:$0xff] %v1571_v59  ;;  %v1438_v2 = vmul.f32 %v2163_v63, %v2661_v1  ;;  %v831_v5 = vpop.f32.mrb[11].mxu0 }
  0xfb   : > { %1763 = vst [vmem:[%s2675_s30 + $0x248] sm:$0xff] %v1635_v60  ;;  %v1502_v4 = vmul.f32 %v2259_v0, %v2661_v1  ;;  %v1151_v6 = vpop.f32.mrb[11].mxu1  ;;  %1698 = vst [vmem:[%s2675_s30 + $0x40] sm:$0xff] %v1570_v61  ;;  %v1437_v7 = vmul.f32 %v2661_v1, %v831_v5 }
  0xfc   : > { %1762 = vst [vmem:[%s2675_s30 + $0x240] sm:$0xff] %v1634_v62  ;;  %v1501_v8 = vmul.f32 %v2661_v1, %v1151_v6  ;;  %v1573_v9 = vadd.f32 %v2666_v3, %v1438_v2 }
  0xfd   : > { %v1637_v10 = vadd.f32 %v2666_v3, %v1502_v4  ;;  %v1572_v11 = vadd.f32 %v2666_v3, %v1437_v7  ;;  %v2166_v13 = vpop.f32.mrb[12].mxu0 }
  0xfe   : > { %v1636_v12 = vadd.f32 %v2666_v3, %v1501_v8  ;;  %v2262_v14 = vpop.f32.mrb[12].mxu1  ;;  %1701 = vst [vmem:[%s2675_s30 + $0x58] sm:$0xff] %v1573_v9  ;;  %v1440_v15 = vmul.f32 %v2166_v13, %v2661_v1  ;;  %v841_v17 = vpop.f32.mrb[13].mxu0 }
  0xff   : > { %1765 = vst [vmem:[%s2675_s30 + $0x258] sm:$0xff] %v1637_v10  ;;  %v1504_v16 = vmul.f32 %v2262_v14, %v2661_v1  ;;  %v1161_v18 = vpop.f32.mrb[13].mxu1  ;;  %1700 = vst [vmem:[%s2675_s30 + $0x50] sm:$0xff] %v1572_v11  ;;  %v1439_v19 = vmul.f32 %v2661_v1, %v841_v17 }
 0x100   : > { %1764 = vst [vmem:[%s2675_s30 + $0x250] sm:$0xff] %v1636_v12  ;;  %v1503_v20 = vmul.f32 %v2661_v1, %v1161_v18  ;;  %v1575_v21 = vadd.f32 %v2666_v3, %v1440_v15 }
 0x101   : > { %v1639_v22 = vadd.f32 %v2666_v3, %v1504_v16  ;;  %v1574_v23 = vadd.f32 %v2666_v3, %v1439_v19  ;;  %v2169_v25 = vpop.f32.mrb[14].mxu0 }
 0x102   : > { %v1638_v24 = vadd.f32 %v2666_v3, %v1503_v20  ;;  %v2265_v26 = vpop.f32.mrb[14].mxu1  ;;  %1703 = vst [vmem:[%s2675_s30 + $0x68] sm:$0xff] %v1575_v21  ;;  %v1442_v27 = vmul.f32 %v2169_v25, %v2661_v1  ;;  %v851_v29 = vpop.f32.mrb[15].mxu0 }
 0x103   : > { %1767 = vst [vmem:[%s2675_s30 + $0x268] sm:$0xff] %v1639_v22  ;;  %v1506_v28 = vmul.f32 %v2265_v26, %v2661_v1  ;;  %v1171_v30 = vpop.f32.mrb[15].mxu1  ;;  %1702 = vst [vmem:[%s2675_s30 + $0x60] sm:$0xff] %v1574_v23  ;;  %v1441_v31 = vmul.f32 %v2661_v1, %v851_v29 }
 0x104   : > { %1766 = vst [vmem:[%s2675_s30 + $0x260] sm:$0xff] %v1638_v24  ;;  %v1505_v32 = vmul.f32 %v2661_v1, %v1171_v30  ;;  %v1577_v33 = vadd.f32 %v2666_v3, %v1442_v27 }
 0x105   : > { %v1641_v34 = vadd.f32 %v2666_v3, %v1506_v28  ;;  %v1576_v35 = vadd.f32 %v2666_v3, %v1441_v31  ;;  %v2172_v37 = vpop.f32.mrb[16].mxu0 }
 0x106   : > { %v1640_v36 = vadd.f32 %v2666_v3, %v1505_v32  ;;  %v2268_v38 = vpop.f32.mrb[16].mxu1  ;;  %1705 = vst [vmem:[%s2675_s30 + $0x78] sm:$0xff] %v1577_v33  ;;  %v1444_v39 = vmul.f32 %v2172_v37, %v2661_v1  ;;  %v861_v41 = vpop.f32.mrb[17].mxu0 }
 0x107   : > { %1769 = vst [vmem:[%s2675_s30 + $0x278] sm:$0xff] %v1641_v34  ;;  %v1508_v40 = vmul.f32 %v2268_v38, %v2661_v1  ;;  %v1181_v42 = vpop.f32.mrb[17].mxu1  ;;  %1704 = vst [vmem:[%s2675_s30 + $0x70] sm:$0xff] %v1576_v35  ;;  %v1443_v43 = vmul.f32 %v2661_v1, %v861_v41 }
 0x108   : > { %1768 = vst [vmem:[%s2675_s30 + $0x270] sm:$0xff] %v1640_v36  ;;  %v1507_v44 = vmul.f32 %v2661_v1, %v1181_v42  ;;  %v1579_v45 = vadd.f32 %v2666_v3, %v1444_v39 }
 0x109   : > { %v1643_v46 = vadd.f32 %v2666_v3, %v1508_v40  ;;  %v1578_v47 = vadd.f32 %v2666_v3, %v1443_v43  ;;  %v2175_v49 = vpop.f32.mrb[18].mxu0 }
 0x10a   : > { %v1642_v48 = vadd.f32 %v2666_v3, %v1507_v44  ;;  %v2271_v50 = vpop.f32.mrb[18].mxu1  ;;  %1707 = vst [vmem:[%s2675_s30 + $0x88] sm:$0xff] %v1579_v45  ;;  %v1446_v51 = vmul.f32 %v2175_v49, %v2661_v1  ;;  %v871_v53 = vpop.f32.mrb[19].mxu0 }
 0x10b   : > { %1771 = vst [vmem:[%s2675_s30 + $0x288] sm:$0xff] %v1643_v46  ;;  %v1510_v52 = vmul.f32 %v2271_v50, %v2661_v1  ;;  %v1191_v54 = vpop.f32.mrb[19].mxu1  ;;  %1706 = vst [vmem:[%s2675_s30 + $0x80] sm:$0xff] %v1578_v47  ;;  %v1445_v55 = vmul.f32 %v2661_v1, %v871_v53 }
 0x10c   : > { %1770 = vst [vmem:[%s2675_s30 + $0x280] sm:$0xff] %v1642_v48  ;;  %v1509_v56 = vmul.f32 %v2661_v1, %v1191_v54  ;;  %v1581_v57 = vadd.f32 %v2666_v3, %v1446_v51 }
 0x10d   : > { %v1645_v58 = vadd.f32 %v2666_v3, %v1510_v52  ;;  %v1580_v59 = vadd.f32 %v2666_v3, %v1445_v55  ;;  %v2178_v61 = vpop.f32.mrb[20].mxu0 }
 0x10e   : > { %v1644_v60 = vadd.f32 %v2666_v3, %v1509_v56  ;;  %v2274_v62 = vpop.f32.mrb[20].mxu1  ;;  %1709 = vst [vmem:[%s2675_s30 + $0x98] sm:$0xff] %v1581_v57  ;;  %v1448_v63 = vmul.f32 %v2178_v61, %v2661_v1  ;;  %v881_v2 = vpop.f32.mrb[21].mxu0 }
 0x10f   : > { %1773 = vst [vmem:[%s2675_s30 + $0x298] sm:$0xff] %v1645_v58  ;;  %v1512_v0 = vmul.f32 %v2274_v62, %v2661_v1  ;;  %v1201_v4 = vpop.f32.mrb[21].mxu1  ;;  %1708 = vst [vmem:[%s2675_s30 + $0x90] sm:$0xff] %v1580_v59  ;;  %v1447_v5 = vmul.f32 %v2661_v1, %v881_v2 }
 0x110   : > { %1772 = vst [vmem:[%s2675_s30 + $0x290] sm:$0xff] %v1644_v60  ;;  %v1511_v6 = vmul.f32 %v2661_v1, %v1201_v4  ;;  %v1583_v7 = vadd.f32 %v2666_v3, %v1448_v63 }
 0x111   : > { %v1647_v8 = vadd.f32 %v2666_v3, %v1512_v0  ;;  %v1582_v9 = vadd.f32 %v2666_v3, %v1447_v5  ;;  %v2181_v11 = vpop.f32.mrb[22].mxu0 }
 0x112   : > { %v1646_v10 = vadd.f32 %v2666_v3, %v1511_v6  ;;  %v2277_v12 = vpop.f32.mrb[22].mxu1  ;;  %1711 = vst [vmem:[%s2675_s30 + $0xa8] sm:$0xff] %v1583_v7  ;;  %v1450_v13 = vmul.f32 %v2181_v11, %v2661_v1  ;;  %v891_v15 = vpop.f32.mrb[23].mxu0 }
 0x113   : > { %1775 = vst [vmem:[%s2675_s30 + $0x2a8] sm:$0xff] %v1647_v8  ;;  %v1514_v14 = vmul.f32 %v2277_v12, %v2661_v1  ;;  %v1211_v16 = vpop.f32.mrb[23].mxu1  ;;  %1710 = vst [vmem:[%s2675_s30 + $0xa0] sm:$0xff] %v1582_v9  ;;  %v1449_v17 = vmul.f32 %v2661_v1, %v891_v15 }
 0x114   : > { %1774 = vst [vmem:[%s2675_s30 + $0x2a0] sm:$0xff] %v1646_v10  ;;  %v1513_v18 = vmul.f32 %v2661_v1, %v1211_v16  ;;  %v1585_v19 = vadd.f32 %v2666_v3, %v1450_v13 }
 0x115   : > { %v1649_v20 = vadd.f32 %v2666_v3, %v1514_v14  ;;  %v1584_v21 = vadd.f32 %v2666_v3, %v1449_v17  ;;  %v2184_v23 = vpop.f32.mrb[24].mxu0 }
 0x116   : > { %v1648_v22 = vadd.f32 %v2666_v3, %v1513_v18  ;;  %v2280_v24 = vpop.f32.mrb[24].mxu1  ;;  %1713 = vst [vmem:[%s2675_s30 + $0xb8] sm:$0xff] %v1585_v19  ;;  %v1452_v25 = vmul.f32 %v2184_v23, %v2661_v1  ;;  %v901_v27 = vpop.f32.mrb[25].mxu0 }
 0x117   : > { %1777 = vst [vmem:[%s2675_s30 + $0x2b8] sm:$0xff] %v1649_v20  ;;  %v1516_v26 = vmul.f32 %v2280_v24, %v2661_v1  ;;  %v1221_v28 = vpop.f32.mrb[25].mxu1  ;;  %1712 = vst [vmem:[%s2675_s30 + $0xb0] sm:$0xff] %v1584_v21  ;;  %v1451_v29 = vmul.f32 %v2661_v1, %v901_v27 }
 0x118   : > { %1776 = vst [vmem:[%s2675_s30 + $0x2b0] sm:$0xff] %v1648_v22  ;;  %v1515_v30 = vmul.f32 %v2661_v1, %v1221_v28  ;;  %v1587_v31 = vadd.f32 %v2666_v3, %v1452_v25 }
 0x119   : > { %v1651_v32 = vadd.f32 %v2666_v3, %v1516_v26  ;;  %v1586_v33 = vadd.f32 %v2666_v3, %v1451_v29  ;;  %v2187_v35 = vpop.f32.mrb[26].mxu0 }
 0x11a   : > { %v1650_v34 = vadd.f32 %v2666_v3, %v1515_v30  ;;  %v2283_v36 = vpop.f32.mrb[26].mxu1  ;;  %1715 = vst [vmem:[%s2675_s30 + $0xc8] sm:$0xff] %v1587_v31  ;;  %v1454_v37 = vmul.f32 %v2187_v35, %v2661_v1  ;;  %v911_v39 = vpop.f32.mrb[27].mxu0 }
 0x11b   : > { %1779 = vst [vmem:[%s2675_s30 + $0x2c8] sm:$0xff] %v1651_v32  ;;  %v1518_v38 = vmul.f32 %v2283_v36, %v2661_v1  ;;  %v1231_v40 = vpop.f32.mrb[27].mxu1  ;;  %1714 = vst [vmem:[%s2675_s30 + $0xc0] sm:$0xff] %v1586_v33  ;;  %v1453_v41 = vmul.f32 %v2661_v1, %v911_v39 }
 0x11c   : > { %1778 = vst [vmem:[%s2675_s30 + $0x2c0] sm:$0xff] %v1650_v34  ;;  %v1517_v42 = vmul.f32 %v2661_v1, %v1231_v40  ;;  %v1589_v43 = vadd.f32 %v2666_v3, %v1454_v37 }
 0x11d   : > { %v1653_v44 = vadd.f32 %v2666_v3, %v1518_v38  ;;  %v1588_v45 = vadd.f32 %v2666_v3, %v1453_v41  ;;  %v2190_v47 = vpop.f32.mrb[28].mxu0 }
 0x11e   : > { %v1652_v46 = vadd.f32 %v2666_v3, %v1517_v42  ;;  %v2286_v48 = vpop.f32.mrb[28].mxu1  ;;  %1717 = vst [vmem:[%s2675_s30 + $0xd8] sm:$0xff] %v1589_v43  ;;  %v1456_v49 = vmul.f32 %v2190_v47, %v2661_v1  ;;  %v921_v51 = vpop.f32.mrb[29].mxu0 }
 0x11f   : > { %1781 = vst [vmem:[%s2675_s30 + $0x2d8] sm:$0xff] %v1653_v44  ;;  %v1520_v50 = vmul.f32 %v2286_v48, %v2661_v1  ;;  %v1241_v52 = vpop.f32.mrb[29].mxu1  ;;  %1716 = vst [vmem:[%s2675_s30 + $0xd0] sm:$0xff] %v1588_v45  ;;  %v1455_v53 = vmul.f32 %v2661_v1, %v921_v51 }
 0x120   : > { %1780 = vst [vmem:[%s2675_s30 + $0x2d0] sm:$0xff] %v1652_v46  ;;  %v1519_v54 = vmul.f32 %v2661_v1, %v1241_v52  ;;  %v1591_v55 = vadd.f32 %v2666_v3, %v1456_v49 }
 0x121   : > { %v1655_v56 = vadd.f32 %v2666_v3, %v1520_v50  ;;  %v1590_v57 = vadd.f32 %v2666_v3, %v1455_v53  ;;  %v2193_v59 = vpop.f32.mrb[30].mxu0 }
 0x122   : > { %v1654_v58 = vadd.f32 %v2666_v3, %v1519_v54  ;;  %v2289_v60 = vpop.f32.mrb[30].mxu1  ;;  %1719 = vst [vmem:[%s2675_s30 + $0xe8] sm:$0xff] %v1591_v55  ;;  %v1458_v61 = vmul.f32 %v2193_v59, %v2661_v1  ;;  %v931_v63 = vpop.f32.mrb[31].mxu0 }
 0x123   : > { %1783 = vst [vmem:[%s2675_s30 + $0x2e8] sm:$0xff] %v1655_v56  ;;  %v1522_v62 = vmul.f32 %v2289_v60, %v2661_v1  ;;  %v1251_v0 = vpop.f32.mrb[31].mxu1  ;;  %1718 = vst [vmem:[%s2675_s30 + $0xe0] sm:$0xff] %v1590_v57  ;;  %v1457_v2 = vmul.f32 %v2661_v1, %v931_v63 }
 0x124   : > { %1782 = vst [vmem:[%s2675_s30 + $0x2e0] sm:$0xff] %v1654_v58  ;;  %v1521_v4 = vmul.f32 %v2661_v1, %v1251_v0  ;;  %v1593_v5 = vadd.f32 %v2666_v3, %v1458_v61 }
 0x125   : > { %v1657_v6 = vadd.f32 %v2666_v3, %v1522_v62  ;;  %v1592_v7 = vadd.f32 %v2666_v3, %v1457_v2  ;;  %v2196_v9 = vpop.f32.mrb[32].mxu0 }
 0x126   : > { %v1656_v8 = vadd.f32 %v2666_v3, %v1521_v4  ;;  %v2292_v10 = vpop.f32.mrb[32].mxu1  ;;  %1721 = vst [vmem:[%s2675_s30 + $0xf8] sm:$0xff] %v1593_v5  ;;  %v1460_v11 = vmul.f32 %v2196_v9, %v2661_v1  ;;  %v941_v13 = vpop.f32.mrb[33].mxu0 }
 0x127   : > { %1785 = vst [vmem:[%s2675_s30 + $0x2f8] sm:$0xff] %v1657_v6  ;;  %v1524_v12 = vmul.f32 %v2292_v10, %v2661_v1  ;;  %v1261_v14 = vpop.f32.mrb[33].mxu1  ;;  %1720 = vst [vmem:[%s2675_s30 + $0xf0] sm:$0xff] %v1592_v7  ;;  %v1459_v15 = vmul.f32 %v2661_v1, %v941_v13 }
 0x128   : > { %1784 = vst [vmem:[%s2675_s30 + $0x2f0] sm:$0xff] %v1656_v8  ;;  %v1523_v16 = vmul.f32 %v2661_v1, %v1261_v14  ;;  %v1595_v17 = vadd.f32 %v2666_v3, %v1460_v11 }
 0x129   : > { %v1659_v18 = vadd.f32 %v2666_v3, %v1524_v12  ;;  %v1594_v19 = vadd.f32 %v2666_v3, %v1459_v15  ;;  %v2199_v21 = vpop.f32.mrb[34].mxu0 }
 0x12a   : > { %v1658_v20 = vadd.f32 %v2666_v3, %v1523_v16  ;;  %v2295_v22 = vpop.f32.mrb[34].mxu1  ;;  %1723 = vst [vmem:[%s2675_s30 + $0x108] sm:$0xff] %v1595_v17  ;;  %v1462_v23 = vmul.f32 %v2199_v21, %v2661_v1  ;;  %v951_v25 = vpop.f32.mrb[35].mxu0 }
 0x12b   : > { %1787 = vst [vmem:[%s2675_s30 + $0x308] sm:$0xff] %v1659_v18  ;;  %v1526_v24 = vmul.f32 %v2295_v22, %v2661_v1  ;;  %v1271_v26 = vpop.f32.mrb[35].mxu1  ;;  %1722 = vst [vmem:[%s2675_s30 + $0x100] sm:$0xff] %v1594_v19  ;;  %v1461_v27 = vmul.f32 %v2661_v1, %v951_v25 }
 0x12c   : > { %1786 = vst [vmem:[%s2675_s30 + $0x300] sm:$0xff] %v1658_v20  ;;  %v1525_v28 = vmul.f32 %v2661_v1, %v1271_v26  ;;  %v1597_v29 = vadd.f32 %v2666_v3, %v1462_v23 }
 0x12d   : > { %v1661_v30 = vadd.f32 %v2666_v3, %v1526_v24  ;;  %v1596_v31 = vadd.f32 %v2666_v3, %v1461_v27  ;;  %v2202_v33 = vpop.f32.mrb[36].mxu0 }
 0x12e   : > { %v1660_v32 = vadd.f32 %v2666_v3, %v1525_v28  ;;  %v2298_v34 = vpop.f32.mrb[36].mxu1  ;;  %1725 = vst [vmem:[%s2675_s30 + $0x118] sm:$0xff] %v1597_v29  ;;  %v1464_v35 = vmul.f32 %v2202_v33, %v2661_v1  ;;  %v961_v37 = vpop.f32.mrb[37].mxu0 }
 0x12f   : > { %1789 = vst [vmem:[%s2675_s30 + $0x318] sm:$0xff] %v1661_v30  ;;  %v1528_v36 = vmul.f32 %v2298_v34, %v2661_v1  ;;  %v1281_v38 = vpop.f32.mrb[37].mxu1  ;;  %1724 = vst [vmem:[%s2675_s30 + $0x110] sm:$0xff] %v1596_v31  ;;  %v1463_v39 = vmul.f32 %v2661_v1, %v961_v37 }
 0x130   : > { %1788 = vst [vmem:[%s2675_s30 + $0x310] sm:$0xff] %v1660_v32  ;;  %v1527_v40 = vmul.f32 %v2661_v1, %v1281_v38  ;;  %v1599_v41 = vadd.f32 %v2666_v3, %v1464_v35 }
 0x131   : > { %v1663_v42 = vadd.f32 %v2666_v3, %v1528_v36  ;;  %v1598_v43 = vadd.f32 %v2666_v3, %v1463_v39  ;;  %v2205_v45 = vpop.f32.mrb[38].mxu0 }
 0x132   : > { %v1662_v44 = vadd.f32 %v2666_v3, %v1527_v40  ;;  %v2301_v46 = vpop.f32.mrb[38].mxu1  ;;  %1727 = vst [vmem:[%s2675_s30 + $0x128] sm:$0xff] %v1599_v41  ;;  %v1466_v47 = vmul.f32 %v2205_v45, %v2661_v1  ;;  %v971_v49 = vpop.f32.mrb[39].mxu0 }
 0x133   : > { %1791 = vst [vmem:[%s2675_s30 + $0x328] sm:$0xff] %v1663_v42  ;;  %v1530_v48 = vmul.f32 %v2301_v46, %v2661_v1  ;;  %v1291_v50 = vpop.f32.mrb[39].mxu1  ;;  %1726 = vst [vmem:[%s2675_s30 + $0x120] sm:$0xff] %v1598_v43  ;;  %v1465_v51 = vmul.f32 %v2661_v1, %v971_v49 }
 0x134   : > { %1790 = vst [vmem:[%s2675_s30 + $0x320] sm:$0xff] %v1662_v44  ;;  %v1529_v52 = vmul.f32 %v2661_v1, %v1291_v50  ;;  %v1601_v53 = vadd.f32 %v2666_v3, %v1466_v47 }
 0x135   : > { %v1665_v54 = vadd.f32 %v2666_v3, %v1530_v48  ;;  %v1600_v55 = vadd.f32 %v2666_v3, %v1465_v51  ;;  %v2208_v57 = vpop.f32.mrb[40].mxu0 }
 0x136   : > { %v1664_v56 = vadd.f32 %v2666_v3, %v1529_v52  ;;  %v2304_v58 = vpop.f32.mrb[40].mxu1  ;;  %1729 = vst [vmem:[%s2675_s30 + $0x138] sm:$0xff] %v1601_v53  ;;  %v1468_v59 = vmul.f32 %v2208_v57, %v2661_v1  ;;  %v981_v61 = vpop.f32.mrb[41].mxu0 }
 0x137   : > { %1793 = vst [vmem:[%s2675_s30 + $0x338] sm:$0xff] %v1665_v54  ;;  %v1532_v60 = vmul.f32 %v2304_v58, %v2661_v1  ;;  %v1301_v62 = vpop.f32.mrb[41].mxu1  ;;  %1728 = vst [vmem:[%s2675_s30 + $0x130] sm:$0xff] %v1600_v55  ;;  %v1467_v63 = vmul.f32 %v2661_v1, %v981_v61 }
 0x138   : > { %1792 = vst [vmem:[%s2675_s30 + $0x330] sm:$0xff] %v1664_v56  ;;  %v1531_v0 = vmul.f32 %v2661_v1, %v1301_v62  ;;  %v1603_v2 = vadd.f32 %v2666_v3, %v1468_v59 }
 0x139   : > { %v1667_v4 = vadd.f32 %v2666_v3, %v1532_v60  ;;  %v1602_v5 = vadd.f32 %v2666_v3, %v1467_v63  ;;  %v2211_v7 = vpop.f32.mrb[42].mxu0 }
 0x13a   : > { %v1666_v6 = vadd.f32 %v2666_v3, %v1531_v0  ;;  %v2307_v8 = vpop.f32.mrb[42].mxu1  ;;  %1731 = vst [vmem:[%s2675_s30 + $0x148] sm:$0xff] %v1603_v2  ;;  %v1470_v9 = vmul.f32 %v2211_v7, %v2661_v1  ;;  %v991_v11 = vpop.f32.mrb[43].mxu0 }
 0x13b   : > { %1795 = vst [vmem:[%s2675_s30 + $0x348] sm:$0xff] %v1667_v4  ;;  %v1534_v10 = vmul.f32 %v2307_v8, %v2661_v1  ;;  %v1311_v12 = vpop.f32.mrb[43].mxu1  ;;  %1730 = vst [vmem:[%s2675_s30 + $0x140] sm:$0xff] %v1602_v5  ;;  %v1469_v13 = vmul.f32 %v2661_v1, %v991_v11 }
 0x13c   : > { %1794 = vst [vmem:[%s2675_s30 + $0x340] sm:$0xff] %v1666_v6  ;;  %v1533_v14 = vmul.f32 %v2661_v1, %v1311_v12  ;;  %v1605_v15 = vadd.f32 %v2666_v3, %v1470_v9 }
 0x13d   : > { %v1669_v16 = vadd.f32 %v2666_v3, %v1534_v10  ;;  %v1604_v17 = vadd.f32 %v2666_v3, %v1469_v13  ;;  %v2214_v19 = vpop.f32.mrb[44].mxu0 }
 0x13e   : > { %v1668_v18 = vadd.f32 %v2666_v3, %v1533_v14  ;;  %v2310_v20 = vpop.f32.mrb[44].mxu1  ;;  %1733 = vst [vmem:[%s2675_s30 + $0x158] sm:$0xff] %v1605_v15  ;;  %v1472_v21 = vmul.f32 %v2214_v19, %v2661_v1  ;;  %v1001_v23 = vpop.f32.mrb[45].mxu0 }
 0x13f   : > { %1797 = vst [vmem:[%s2675_s30 + $0x358] sm:$0xff] %v1669_v16  ;;  %v1536_v22 = vmul.f32 %v2310_v20, %v2661_v1  ;;  %v1321_v24 = vpop.f32.mrb[45].mxu1  ;;  %1732 = vst [vmem:[%s2675_s30 + $0x150] sm:$0xff] %v1604_v17  ;;  %v1471_v25 = vmul.f32 %v2661_v1, %v1001_v23 }
 0x140   : > { %1796 = vst [vmem:[%s2675_s30 + $0x350] sm:$0xff] %v1668_v18  ;;  %v1535_v26 = vmul.f32 %v2661_v1, %v1321_v24  ;;  %v1607_v27 = vadd.f32 %v2666_v3, %v1472_v21 }
 0x141   : > { %v1671_v28 = vadd.f32 %v2666_v3, %v1536_v22  ;;  %v1606_v29 = vadd.f32 %v2666_v3, %v1471_v25  ;;  %v2217_v31 = vpop.f32.mrb[46].mxu0 }
 0x142   : > { %v1670_v30 = vadd.f32 %v2666_v3, %v1535_v26  ;;  %v2313_v32 = vpop.f32.mrb[46].mxu1  ;;  %1735 = vst [vmem:[%s2675_s30 + $0x168] sm:$0xff] %v1607_v27  ;;  %v1474_v33 = vmul.f32 %v2217_v31, %v2661_v1  ;;  %v1011_v35 = vpop.f32.mrb[47].mxu0 }
 0x143   : > { %1799 = vst [vmem:[%s2675_s30 + $0x368] sm:$0xff] %v1671_v28  ;;  %v1538_v34 = vmul.f32 %v2313_v32, %v2661_v1  ;;  %v1331_v36 = vpop.f32.mrb[47].mxu1  ;;  %1734 = vst [vmem:[%s2675_s30 + $0x160] sm:$0xff] %v1606_v29  ;;  %v1473_v37 = vmul.f32 %v2661_v1, %v1011_v35 }
 0x144   : > { %1798 = vst [vmem:[%s2675_s30 + $0x360] sm:$0xff] %v1670_v30  ;;  %v1537_v38 = vmul.f32 %v2661_v1, %v1331_v36  ;;  %v1609_v39 = vadd.f32 %v2666_v3, %v1474_v33 }
 0x145   : > { %v1673_v40 = vadd.f32 %v2666_v3, %v1538_v34  ;;  %v1608_v41 = vadd.f32 %v2666_v3, %v1473_v37  ;;  %v2220_v43 = vpop.f32.mrb[48].mxu0 }
 0x146   : > { %v1672_v42 = vadd.f32 %v2666_v3, %v1537_v38  ;;  %v2316_v44 = vpop.f32.mrb[48].mxu1  ;;  %1737 = vst [vmem:[%s2675_s30 + $0x178] sm:$0xff] %v1609_v39  ;;  %v1476_v45 = vmul.f32 %v2220_v43, %v2661_v1  ;;  %v1021_v47 = vpop.f32.mrb[49].mxu0 }
 0x147   : > { %1801 = vst [vmem:[%s2675_s30 + $0x378] sm:$0xff] %v1673_v40  ;;  %v1540_v46 = vmul.f32 %v2316_v44, %v2661_v1  ;;  %v1341_v48 = vpop.f32.mrb[49].mxu1  ;;  %1736 = vst [vmem:[%s2675_s30 + $0x170] sm:$0xff] %v1608_v41  ;;  %v1475_v49 = vmul.f32 %v2661_v1, %v1021_v47 }
 0x148   : > { %1800 = vst [vmem:[%s2675_s30 + $0x370] sm:$0xff] %v1672_v42  ;;  %v1539_v50 = vmul.f32 %v2661_v1, %v1341_v48  ;;  %v1611_v51 = vadd.f32 %v2666_v3, %v1476_v45 }
 0x149   : > { %v1675_v52 = vadd.f32 %v2666_v3, %v1540_v46  ;;  %v1610_v53 = vadd.f32 %v2666_v3, %v1475_v49  ;;  %v2223_v55 = vpop.f32.mrb[50].mxu0 }
 0x14a   : > { %v1674_v54 = vadd.f32 %v2666_v3, %v1539_v50  ;;  %v2319_v56 = vpop.f32.mrb[50].mxu1  ;;  %1739 = vst [vmem:[%s2675_s30 + $0x188] sm:$0xff] %v1611_v51  ;;  %v1478_v57 = vmul.f32 %v2223_v55, %v2661_v1  ;;  %v1031_v59 = vpop.f32.mrb[51].mxu0 }
 0x14b   : > { %1803 = vst [vmem:[%s2675_s30 + $0x388] sm:$0xff] %v1675_v52  ;;  %v1542_v58 = vmul.f32 %v2319_v56, %v2661_v1  ;;  %v1351_v60 = vpop.f32.mrb[51].mxu1  ;;  %1738 = vst [vmem:[%s2675_s30 + $0x180] sm:$0xff] %v1610_v53  ;;  %v1477_v61 = vmul.f32 %v2661_v1, %v1031_v59 }
 0x14c   : > { %1802 = vst [vmem:[%s2675_s30 + $0x380] sm:$0xff] %v1674_v54  ;;  %v1541_v62 = vmul.f32 %v2661_v1, %v1351_v60  ;;  %v1613_v63 = vadd.f32 %v2666_v3, %v1478_v57 }
 0x14d   : > { %v1677_v0 = vadd.f32 %v2666_v3, %v1542_v58  ;;  %v1612_v2 = vadd.f32 %v2666_v3, %v1477_v61  ;;  %v2226_v5 = vpop.f32.mrb[52].mxu0 }
 0x14e   : > { %v1676_v4 = vadd.f32 %v2666_v3, %v1541_v62  ;;  %v2322_v6 = vpop.f32.mrb[52].mxu1  ;;  %1741 = vst [vmem:[%s2675_s30 + $0x198] sm:$0xff] %v1613_v63  ;;  %v1480_v7 = vmul.f32 %v2226_v5, %v2661_v1  ;;  %v1041_v9 = vpop.f32.mrb[53].mxu0 }
 0x14f   : > { %1805 = vst [vmem:[%s2675_s30 + $0x398] sm:$0xff] %v1677_v0  ;;  %v1544_v8 = vmul.f32 %v2322_v6, %v2661_v1  ;;  %v1361_v10 = vpop.f32.mrb[53].mxu1  ;;  %1740 = vst [vmem:[%s2675_s30 + $0x190] sm:$0xff] %v1612_v2  ;;  %v1479_v11 = vmul.f32 %v2661_v1, %v1041_v9 }
 0x150   : > { %1804 = vst [vmem:[%s2675_s30 + $0x390] sm:$0xff] %v1676_v4  ;;  %v1543_v12 = vmul.f32 %v2661_v1, %v1361_v10  ;;  %v1615_v13 = vadd.f32 %v2666_v3, %v1480_v7 }
 0x151   : > { %v1679_v14 = vadd.f32 %v2666_v3, %v1544_v8  ;;  %v1614_v15 = vadd.f32 %v2666_v3, %v1479_v11  ;;  %v2229_v17 = vpop.f32.mrb[54].mxu0 }
 0x152   : > { %v1678_v16 = vadd.f32 %v2666_v3, %v1543_v12  ;;  %v2325_v18 = vpop.f32.mrb[54].mxu1  ;;  %1743 = vst [vmem:[%s2675_s30 + $0x1a8] sm:$0xff] %v1615_v13  ;;  %v1482_v19 = vmul.f32 %v2229_v17, %v2661_v1  ;;  %v1051_v21 = vpop.f32.mrb[55].mxu0 }
 0x153   : > { %1807 = vst [vmem:[%s2675_s30 + $0x3a8] sm:$0xff] %v1679_v14  ;;  %v1546_v20 = vmul.f32 %v2325_v18, %v2661_v1  ;;  %v1371_v22 = vpop.f32.mrb[55].mxu1  ;;  %1742 = vst [vmem:[%s2675_s30 + $0x1a0] sm:$0xff] %v1614_v15  ;;  %v1481_v23 = vmul.f32 %v2661_v1, %v1051_v21 }
 0x154   : > { %1806 = vst [vmem:[%s2675_s30 + $0x3a0] sm:$0xff] %v1678_v16  ;;  %v1545_v24 = vmul.f32 %v2661_v1, %v1371_v22  ;;  %v1617_v25 = vadd.f32 %v2666_v3, %v1482_v19 }
 0x155   : > { %v1681_v26 = vadd.f32 %v2666_v3, %v1546_v20  ;;  %v1616_v27 = vadd.f32 %v2666_v3, %v1481_v23  ;;  %v2232_v29 = vpop.f32.mrb[56].mxu0 }
 0x156   : > { %v1680_v28 = vadd.f32 %v2666_v3, %v1545_v24  ;;  %v2328_v30 = vpop.f32.mrb[56].mxu1  ;;  %1745 = vst [vmem:[%s2675_s30 + $0x1b8] sm:$0xff] %v1617_v25  ;;  %v1484_v31 = vmul.f32 %v2232_v29, %v2661_v1  ;;  %v1061_v33 = vpop.f32.mrb[57].mxu0 }
 0x157   : > { %1809 = vst [vmem:[%s2675_s30 + $0x3b8] sm:$0xff] %v1681_v26  ;;  %v1548_v32 = vmul.f32 %v2328_v30, %v2661_v1  ;;  %v1381_v34 = vpop.f32.mrb[57].mxu1  ;;  %1744 = vst [vmem:[%s2675_s30 + $0x1b0] sm:$0xff] %v1616_v27  ;;  %v1483_v35 = vmul.f32 %v2661_v1, %v1061_v33 }
 0x158   : > { %1808 = vst [vmem:[%s2675_s30 + $0x3b0] sm:$0xff] %v1680_v28  ;;  %v1547_v36 = vmul.f32 %v2661_v1, %v1381_v34  ;;  %v1619_v37 = vadd.f32 %v2666_v3, %v1484_v31 }
 0x159   : > { %v1683_v38 = vadd.f32 %v2666_v3, %v1548_v32  ;;  %v1618_v39 = vadd.f32 %v2666_v3, %v1483_v35  ;;  %v2235_v41 = vpop.f32.mrb[58].mxu0 }
 0x15a   : > { %v1682_v40 = vadd.f32 %v2666_v3, %v1547_v36  ;;  %v2331_v42 = vpop.f32.mrb[58].mxu1  ;;  %1747 = vst [vmem:[%s2675_s30 + $0x1c8] sm:$0xff] %v1619_v37  ;;  %v1486_v43 = vmul.f32 %v2235_v41, %v2661_v1  ;;  %v1071_v45 = vpop.f32.mrb[59].mxu0 }
 0x15b   : > { %1811 = vst [vmem:[%s2675_s30 + $0x3c8] sm:$0xff] %v1683_v38  ;;  %v1550_v44 = vmul.f32 %v2331_v42, %v2661_v1  ;;  %v1391_v46 = vpop.f32.mrb[59].mxu1  ;;  %1746 = vst [vmem:[%s2675_s30 + $0x1c0] sm:$0xff] %v1618_v39  ;;  %v1485_v47 = vmul.f32 %v2661_v1, %v1071_v45 }
 0x15c   : > { %1810 = vst [vmem:[%s2675_s30 + $0x3c0] sm:$0xff] %v1682_v40  ;;  %v1549_v48 = vmul.f32 %v2661_v1, %v1391_v46  ;;  %v1621_v49 = vadd.f32 %v2666_v3, %v1486_v43 }
 0x15d   : > { %v1685_v50 = vadd.f32 %v2666_v3, %v1550_v44  ;;  %v1620_v51 = vadd.f32 %v2666_v3, %v1485_v47  ;;  %v2238_v53 = vpop.f32.mrb[60].mxu0 }
 0x15e   : > { %v1684_v52 = vadd.f32 %v2666_v3, %v1549_v48  ;;  %v2334_v54 = vpop.f32.mrb[60].mxu1  ;;  %1749 = vst [vmem:[%s2675_s30 + $0x1d8] sm:$0xff] %v1621_v49  ;;  %v1488_v55 = vmul.f32 %v2238_v53, %v2661_v1  ;;  %v1081_v57 = vpop.f32.mrb[61].mxu0 }
 0x15f   : > { %1813 = vst [vmem:[%s2675_s30 + $0x3d8] sm:$0xff] %v1685_v50  ;;  %v1552_v56 = vmul.f32 %v2334_v54, %v2661_v1  ;;  %v1401_v58 = vpop.f32.mrb[61].mxu1  ;;  %1748 = vst [vmem:[%s2675_s30 + $0x1d0] sm:$0xff] %v1620_v51  ;;  %v1487_v59 = vmul.f32 %v2661_v1, %v1081_v57 }
 0x160   : > { %1812 = vst [vmem:[%s2675_s30 + $0x3d0] sm:$0xff] %v1684_v52  ;;  %v1551_v60 = vmul.f32 %v2661_v1, %v1401_v58  ;;  %v1623_v61 = vadd.f32 %v2666_v3, %v1488_v55 }
 0x161   : > { %v1687_v62 = vadd.f32 %v2666_v3, %v1552_v56  ;;  %v1622_v63 = vadd.f32 %v2666_v3, %v1487_v59  ;;  %v2241_v2 = vpop.f32.mrb[62].mxu0 }
 0x162   : > { %v1686_v0 = vadd.f32 %v2666_v3, %v1551_v60  ;;  %v2337_v4 = vpop.f32.mrb[62].mxu1  ;;  %1751 = vst [vmem:[%s2675_s30 + $0x1e8] sm:$0xff] %v1623_v61  ;;  %v1490_v5 = vmul.f32 %v2241_v2, %v2661_v1  ;;  %v1091_v7 = vpop.f32.mrb[63].mxu0 }
 0x163   : > { %1815 = vst [vmem:[%s2675_s30 + $0x3e8] sm:$0xff] %v1687_v62  ;;  %v1554_v6 = vmul.f32 %v2337_v4, %v2661_v1  ;;  %v1411_v8 = vpop.f32.mrb[63].mxu1  ;;  %1750 = vst [vmem:[%s2675_s30 + $0x1e0] sm:$0xff] %v1622_v63  ;;  %v1489_v9 = vmul.f32 %v2661_v1, %v1091_v7 }
 0x164   : > { %1814 = vst [vmem:[%s2675_s30 + $0x3e0] sm:$0xff] %v1686_v0  ;;  %v1553_v10 = vmul.f32 %v2661_v1, %v1411_v8  ;;  %v1625_v11 = vadd.f32 %v2666_v3, %v1490_v5 }
 0x165   : > { %v1689_v12 = vadd.f32 %v2666_v3, %v1554_v6  ;;  %v1624_v13 = vadd.f32 %v2666_v3, %v1489_v9 }
 0x166   : > { %v1688_v14 = vadd.f32 %v2666_v3, %v1553_v10  ;;  %1753 = vst [vmem:[%s2675_s30 + $0x1f8] sm:$0xff] %v1625_v11 }
 0x167   : > { %1817 = vst [vmem:[%s2675_s30 + $0x3f8] sm:$0xff] %v1689_v12  ;;  %1752 = vst [vmem:[%s2675_s30 + $0x1f0] sm:$0xff] %v1624_v13 }
 0x168   : > { %1816 = vst [vmem:[%s2675_s30 + $0x3f0] sm:$0xff] %v1688_v14 }
 0x169 PF: > { %s14_s15 = sadd.s32 1, %s2354_s15  }
 0x16a   : > { %p11_p4 = scmp.ge.s32.totalorder %s14_s15, 4  }
 0x16c   :  { %13 = sbr.rel (!%p11_p4) target bundleno = 1 (0x1), region = 66 }

</bundles_post_ra>
